<compile_context>
chip_gen: v6e
topology: v6e:2x2x1
jax: 0.10.0
libtpu: 0.0.40
codegen_flags: <defaults>
</compile_context>

<pallas_src>
import jax
import jax.numpy as jnp
from jax.experimental import pallas as pl
from jax.experimental.pallas import tpu as pltpu

LANES = 128          # TPU vreg lane width
_N_PARAMS = 33       # 4 (w1) + 4 (b1) + 16 (w2) + 4 (b2) + 4 (w3) + 1 (b3)


def _mlp_kernel(p_ref, x_ref, o_ref):
    """p_ref: SMEM f32[33] packed params.  x_ref / o_ref: [tm, 128] f32 VMEM.

    Packed-param layout (flat, row-major):
      0:4   w1[o, 0]        4:8   b1[o]
      8:24  w2[o, i]        24:28 b2[o]
      28:32 w3[0, i]        32    b3[0]
    """
    # Hoist all scalar (SMEM) reads so the scalar unit stays ahead of the VPU.
    w1 = [p_ref[o] for o in range(4)]
    b1 = [p_ref[4 + o] for o in range(4)]
    w2 = [[p_ref[8 + 4 * o + i] for i in range(4)] for o in range(4)]
    b2 = [p_ref[24 + o] for o in range(4)]
    w3 = [p_ref[28 + i] for i in range(4)]
    b3 = p_ref[32]

    x = x_ref[...]                                           # [tm, 128] f32

    # Layer 1: Linear(1 -> 4) + Sigmoid  (scalar * plane + scalar), EUP sigmoid.
    h1 = [jax.nn.sigmoid(x * w1[o] + b1[o]) for o in range(4)]

    # Layer 2: Linear(4 -> 4) + Sigmoid as 16 VPU FMAs (no MXU handoff).
    h2 = []
    for o in range(4):
        acc = h1[0] * w2[o][0] + b2[o]
        for i in range(1, 4):
            acc = acc + h1[i] * w2[o][i]
        h2.append(jax.nn.sigmoid(acc))

    # Layer 3: Linear(4 -> 1) as 4 FMAs (lane-dense output plane).
    y = h2[0] * w3[0] + b3
    for i in range(1, 4):
        y = y + h2[i] * w3[i]

    o_ref[...] = y.astype(o_ref.dtype)


def _round_up(v, m):
    return ((v + m - 1) // m) * m


def _pack_params(params):
    """Flatten PyTorch-convention weights/biases into a single f32[33] buffer."""
    return jnp.concatenate([
        params["w1"].reshape(-1),   # [4]  w1[o, 0]
        params["b1"].reshape(-1),   # [4]
        params["w2"].reshape(-1),   # [16] w2[o, i] row-major
        params["b2"].reshape(-1),   # [4]
        params["w3"].reshape(-1),   # [4]  w3[0, i]
        params["b3"].reshape(-1),   # [1]
    ]).astype(jnp.float32)


def mlp_forward(x, params, *, max_tile_rows=512):
    """x: [B, 1] float32 (PyTorch nn.Linear input layout)."""
    B = x.shape[0]
    packed = _pack_params(params)

    # Lane-dense batch layout: pad B -> padded_rows * 128 and view as 2-D slab.
    rows = pl.cdiv(B, LANES)
    tm = max_tile_rows if rows >= max_tile_rows else _round_up(rows, 8)
    padded_rows = _round_up(rows, tm)
    n_tiles = padded_rows // tm
    total = padded_rows * LANES

    x_flat = x.reshape(-1).astype(jnp.float32)
    x_slab = jnp.pad(x_flat, (0, total - B)).reshape(padded_rows, LANES)

    out_slab = pl.pallas_call(
        _mlp_kernel,
        out_shape=jax.ShapeDtypeStruct((padded_rows, LANES), jnp.float32),
        grid_spec=pltpu.PrefetchScalarGridSpec(
            num_scalar_prefetch=1,                       # packed params -> SMEM
            grid=(n_tiles,),
            in_specs=[pl.BlockSpec((tm, LANES), lambda i, p: (i, 0))],
            out_specs=pl.BlockSpec((tm, LANES), lambda i, p: (i, 0)),
        ),
        compiler_params=pltpu.CompilerParams(
            dimension_semantics=("parallel",)),
    )(packed, x_slab)

    # Back to the PyTorch [B, 1] layout.
    return out_slab.reshape(-1)[:B].reshape(B, 1)


def init_params(key):
    """Deterministic init mirroring nn.Linear shapes: weight [out, in], bias [out]."""
    k1, k2, k3, k4, k5, k6 = jax.random.split(key, 6)

    def u(k, shape, fan_in):
        bound = 1.0 / jnp.sqrt(fan_in)
        return jax.random.uniform(k, shape, jnp.float32, -bound, bound)

    return {
        "w1": u(k1, (4, 1), 1.0), "b1": u(k2, (4,), 1.0),
        "w2": u(k3, (4, 4), 4.0), "b2": u(k4, (4,), 4.0),
        "w3": u(k5, (1, 4), 4.0), "b3": u(k6, (1,), 4.0),
    }


def reference_forward(x, p):
    h1 = jax.nn.sigmoid(x @ p["w1"].T + p["b1"])
    h2 = jax.nn.sigmoid(h1 @ p["w2"].T + p["b2"])
    return h2 @ p["w3"].T + p["b3"]


if __name__ == "__main__":
    key = jax.random.PRNGKey(0)
    kp, kx = jax.random.split(key)
    params = init_params(kp)
    x = jax.random.normal(kx, (8, 1), dtype=jnp.float32)   # batch=8, in_features=1

    out = mlp_forward(x, params)
    out = jax.block_until_ready(out)

    ref = reference_forward(x, params)
    assert out.shape == (8, 1), out.shape
    assert jnp.allclose(out, ref, atol=1e-5, rtol=1e-5), (out, ref)
    print("KERNEL_OK")
</pallas_src>

<mosaic_0001>
module attributes {stable_mosaic.version = 11 : i64} {
  func.func @_mlp_kernel(%arg0: i32, %arg1: memref<33xf32, #tpu.memory_space<smem>>, %arg2: memref<8x128xf32, #tpu.memory_space<vmem>>, %arg3: memref<8x128xf32, #tpu.memory_space<vmem>>) attributes {dimension_semantics = [#tpu.dimension_semantics<parallel>], iteration_bounds = array<i64: 1>, scalar_prefetch = 1 : i64, scratch_operands = 0 : i64, tpu.core_type = #tpu.core_type<tc>, window_params = [{transform_indices = @transform_0, window_bounds = array<i64: 8, 128>}, {transform_indices = @transform_1, window_bounds = array<i64: 8, 128>}]} {
    %c0 = arith.constant 0 : index
    %0 = memref.load %arg1[%c0] : memref<33xf32, #tpu.memory_space<smem>>
    %c1 = arith.constant 1 : index
    %1 = memref.load %arg1[%c1] : memref<33xf32, #tpu.memory_space<smem>>
    %c2 = arith.constant 2 : index
    %2 = memref.load %arg1[%c2] : memref<33xf32, #tpu.memory_space<smem>>
    %c3 = arith.constant 3 : index
    %3 = memref.load %arg1[%c3] : memref<33xf32, #tpu.memory_space<smem>>
    %c4 = arith.constant 4 : index
    %4 = memref.load %arg1[%c4] : memref<33xf32, #tpu.memory_space<smem>>
    %c5 = arith.constant 5 : index
    %5 = memref.load %arg1[%c5] : memref<33xf32, #tpu.memory_space<smem>>
    %c6 = arith.constant 6 : index
    %6 = memref.load %arg1[%c6] : memref<33xf32, #tpu.memory_space<smem>>
    %c7 = arith.constant 7 : index
    %7 = memref.load %arg1[%c7] : memref<33xf32, #tpu.memory_space<smem>>
    %c8 = arith.constant 8 : index
    %8 = memref.load %arg1[%c8] : memref<33xf32, #tpu.memory_space<smem>>
    %c9 = arith.constant 9 : index
    %9 = memref.load %arg1[%c9] : memref<33xf32, #tpu.memory_space<smem>>
    %c10 = arith.constant 10 : index
    %10 = memref.load %arg1[%c10] : memref<33xf32, #tpu.memory_space<smem>>
    %c11 = arith.constant 11 : index
    %11 = memref.load %arg1[%c11] : memref<33xf32, #tpu.memory_space<smem>>
    %c12 = arith.constant 12 : index
    %12 = memref.load %arg1[%c12] : memref<33xf32, #tpu.memory_space<smem>>
    %c13 = arith.constant 13 : index
    %13 = memref.load %arg1[%c13] : memref<33xf32, #tpu.memory_space<smem>>
    %c14 = arith.constant 14 : index
    %14 = memref.load %arg1[%c14] : memref<33xf32, #tpu.memory_space<smem>>
    %c15 = arith.constant 15 : index
    %15 = memref.load %arg1[%c15] : memref<33xf32, #tpu.memory_space<smem>>
    %c16 = arith.constant 16 : index
    %16 = memref.load %arg1[%c16] : memref<33xf32, #tpu.memory_space<smem>>
    %c17 = arith.constant 17 : index
    %17 = memref.load %arg1[%c17] : memref<33xf32, #tpu.memory_space<smem>>
    %c18 = arith.constant 18 : index
    %18 = memref.load %arg1[%c18] : memref<33xf32, #tpu.memory_space<smem>>
    %c19 = arith.constant 19 : index
    %19 = memref.load %arg1[%c19] : memref<33xf32, #tpu.memory_space<smem>>
    %c20 = arith.constant 20 : index
    %20 = memref.load %arg1[%c20] : memref<33xf32, #tpu.memory_space<smem>>
    %c21 = arith.constant 21 : index
    %21 = memref.load %arg1[%c21] : memref<33xf32, #tpu.memory_space<smem>>
    %c22 = arith.constant 22 : index
    %22 = memref.load %arg1[%c22] : memref<33xf32, #tpu.memory_space<smem>>
    %c23 = arith.constant 23 : index
    %23 = memref.load %arg1[%c23] : memref<33xf32, #tpu.memory_space<smem>>
    %c24 = arith.constant 24 : index
    %24 = memref.load %arg1[%c24] : memref<33xf32, #tpu.memory_space<smem>>
    %c25 = arith.constant 25 : index
    %25 = memref.load %arg1[%c25] : memref<33xf32, #tpu.memory_space<smem>>
    %c26 = arith.constant 26 : index
    %26 = memref.load %arg1[%c26] : memref<33xf32, #tpu.memory_space<smem>>
    %c27 = arith.constant 27 : index
    %27 = memref.load %arg1[%c27] : memref<33xf32, #tpu.memory_space<smem>>
    %c28 = arith.constant 28 : index
    %28 = memref.load %arg1[%c28] : memref<33xf32, #tpu.memory_space<smem>>
    %c29 = arith.constant 29 : index
    %29 = memref.load %arg1[%c29] : memref<33xf32, #tpu.memory_space<smem>>
    %c30 = arith.constant 30 : index
    %30 = memref.load %arg1[%c30] : memref<33xf32, #tpu.memory_space<smem>>
    %c31 = arith.constant 31 : index
    %31 = memref.load %arg1[%c31] : memref<33xf32, #tpu.memory_space<smem>>
    %c32 = arith.constant 32 : index
    %32 = memref.load %arg1[%c32] : memref<33xf32, #tpu.memory_space<smem>>
    %c0_0 = arith.constant 0 : index
    %c0_1 = arith.constant 0 : index
    %33 = vector.load %arg2[%c0_0, %c0_1] : memref<8x128xf32, #tpu.memory_space<vmem>>, vector<8x128xf32>
    %34 = vector.broadcast %0 : f32 to vector<8x128xf32>
    %35 = arith.mulf %33, %34 : vector<8x128xf32>
    %36 = vector.broadcast %4 : f32 to vector<8x128xf32>
    %37 = arith.addf %35, %36 : vector<8x128xf32>
    %38 = arith.negf %37 : vector<8x128xf32>
    %39 = math.exp %38 : vector<8x128xf32>
    %cst = arith.constant 1.000000e+00 : f32
    %40 = vector.broadcast %cst : f32 to vector<8x128xf32>
    %41 = arith.addf %40, %39 : vector<8x128xf32>
    %42 = arith.divf %40, %41 : vector<8x128xf32>
    %43 = vector.broadcast %1 : f32 to vector<8x128xf32>
    %44 = arith.mulf %33, %43 : vector<8x128xf32>
    %45 = vector.broadcast %5 : f32 to vector<8x128xf32>
    %46 = arith.addf %44, %45 : vector<8x128xf32>
    %47 = arith.negf %46 : vector<8x128xf32>
    %48 = math.exp %47 : vector<8x128xf32>
    %cst_2 = arith.constant 1.000000e+00 : f32
    %49 = vector.broadcast %cst_2 : f32 to vector<8x128xf32>
    %50 = arith.addf %49, %48 : vector<8x128xf32>
    %51 = arith.divf %49, %50 : vector<8x128xf32>
    %52 = vector.broadcast %2 : f32 to vector<8x128xf32>
    %53 = arith.mulf %33, %52 : vector<8x128xf32>
    %54 = vector.broadcast %6 : f32 to vector<8x128xf32>
    %55 = arith.addf %53, %54 : vector<8x128xf32>
    %56 = arith.negf %55 : vector<8x128xf32>
    %57 = math.exp %56 : vector<8x128xf32>
    %cst_3 = arith.constant 1.000000e+00 : f32
    %58 = vector.broadcast %cst_3 : f32 to vector<8x128xf32>
    %59 = arith.addf %58, %57 : vector<8x128xf32>
    %60 = arith.divf %58, %59 : vector<8x128xf32>
    %61 = vector.broadcast %3 : f32 to vector<8x128xf32>
    %62 = arith.mulf %33, %61 : vector<8x128xf32>
    %63 = vector.broadcast %7 : f32 to vector<8x128xf32>
    %64 = arith.addf %62, %63 : vector<8x128xf32>
    %65 = arith.negf %64 : vector<8x128xf32>
    %66 = math.exp %65 : vector<8x128xf32>
    %cst_4 = arith.constant 1.000000e+00 : f32
    %67 = vector.broadcast %cst_4 : f32 to vector<8x128xf32>
    %68 = arith.addf %67, %66 : vector<8x128xf32>
    %69 = arith.divf %67, %68 : vector<8x128xf32>
    %70 = vector.broadcast %8 : f32 to vector<8x128xf32>
    %71 = arith.mulf %42, %70 : vector<8x128xf32>
    %72 = vector.broadcast %24 : f32 to vector<8x128xf32>
    %73 = arith.addf %71, %72 : vector<8x128xf32>
    %74 = vector.broadcast %9 : f32 to vector<8x128xf32>
    %75 = arith.mulf %51, %74 : vector<8x128xf32>
    %76 = arith.addf %73, %75 : vector<8x128xf32>
    %77 = vector.broadcast %10 : f32 to vector<8x128xf32>
    %78 = arith.mulf %60, %77 : vector<8x128xf32>
    %79 = arith.addf %76, %78 : vector<8x128xf32>
    %80 = vector.broadcast %11 : f32 to vector<8x128xf32>
    %81 = arith.mulf %69, %80 : vector<8x128xf32>
    %82 = arith.addf %79, %81 : vector<8x128xf32>
    %83 = arith.negf %82 : vector<8x128xf32>
    %84 = math.exp %83 : vector<8x128xf32>
    %cst_5 = arith.constant 1.000000e+00 : f32
    %85 = vector.broadcast %cst_5 : f32 to vector<8x128xf32>
    %86 = arith.addf %85, %84 : vector<8x128xf32>
    %87 = arith.divf %85, %86 : vector<8x128xf32>
    %88 = vector.broadcast %12 : f32 to vector<8x128xf32>
    %89 = arith.mulf %42, %88 : vector<8x128xf32>
    %90 = vector.broadcast %25 : f32 to vector<8x128xf32>
    %91 = arith.addf %89, %90 : vector<8x128xf32>
    %92 = vector.broadcast %13 : f32 to vector<8x128xf32>
    %93 = arith.mulf %51, %92 : vector<8x128xf32>
    %94 = arith.addf %91, %93 : vector<8x128xf32>
    %95 = vector.broadcast %14 : f32 to vector<8x128xf32>
    %96 = arith.mulf %60, %95 : vector<8x128xf32>
    %97 = arith.addf %94, %96 : vector<8x128xf32>
    %98 = vector.broadcast %15 : f32 to vector<8x128xf32>
    %99 = arith.mulf %69, %98 : vector<8x128xf32>
    %100 = arith.addf %97, %99 : vector<8x128xf32>
    %101 = arith.negf %100 : vector<8x128xf32>
    %102 = math.exp %101 : vector<8x128xf32>
    %cst_6 = arith.constant 1.000000e+00 : f32
    %103 = vector.broadcast %cst_6 : f32 to vector<8x128xf32>
    %104 = arith.addf %103, %102 : vector<8x128xf32>
    %105 = arith.divf %103, %104 : vector<8x128xf32>
    %106 = vector.broadcast %16 : f32 to vector<8x128xf32>
    %107 = arith.mulf %42, %106 : vector<8x128xf32>
    %108 = vector.broadcast %26 : f32 to vector<8x128xf32>
    %109 = arith.addf %107, %108 : vector<8x128xf32>
    %110 = vector.broadcast %17 : f32 to vector<8x128xf32>
    %111 = arith.mulf %51, %110 : vector<8x128xf32>
    %112 = arith.addf %109, %111 : vector<8x128xf32>
    %113 = vector.broadcast %18 : f32 to vector<8x128xf32>
    %114 = arith.mulf %60, %113 : vector<8x128xf32>
    %115 = arith.addf %112, %114 : vector<8x128xf32>
    %116 = vector.broadcast %19 : f32 to vector<8x128xf32>
    %117 = arith.mulf %69, %116 : vector<8x128xf32>
    %118 = arith.addf %115, %117 : vector<8x128xf32>
    %119 = arith.negf %118 : vector<8x128xf32>
    %120 = math.exp %119 : vector<8x128xf32>
    %cst_7 = arith.constant 1.000000e+00 : f32
    %121 = vector.broadcast %cst_7 : f32 to vector<8x128xf32>
    %122 = arith.addf %121, %120 : vector<8x128xf32>
    %123 = arith.divf %121, %122 : vector<8x128xf32>
    %124 = vector.broadcast %20 : f32 to vector<8x128xf32>
    %125 = arith.mulf %42, %124 : vector<8x128xf32>
    %126 = vector.broadcast %27 : f32 to vector<8x128xf32>
    %127 = arith.addf %125, %126 : vector<8x128xf32>
    %128 = vector.broadcast %21 : f32 to vector<8x128xf32>
    %129 = arith.mulf %51, %128 : vector<8x128xf32>
    %130 = arith.addf %127, %129 : vector<8x128xf32>
    %131 = vector.broadcast %22 : f32 to vector<8x128xf32>
    %132 = arith.mulf %60, %131 : vector<8x128xf32>
    %133 = arith.addf %130, %132 : vector<8x128xf32>
    %134 = vector.broadcast %23 : f32 to vector<8x128xf32>
    %135 = arith.mulf %69, %134 : vector<8x128xf32>
    %136 = arith.addf %133, %135 : vector<8x128xf32>
    %137 = arith.negf %136 : vector<8x128xf32>
    %138 = math.exp %137 : vector<8x128xf32>
    %cst_8 = arith.constant 1.000000e+00 : f32
    %139 = vector.broadcast %cst_8 : f32 to vector<8x128xf32>
    %140 = arith.addf %139, %138 : vector<8x128xf32>
    %141 = arith.divf %139, %140 : vector<8x128xf32>
    %142 = vector.broadcast %28 : f32 to vector<8x128xf32>
    %143 = arith.mulf %87, %142 : vector<8x128xf32>
    %144 = vector.broadcast %32 : f32 to vector<8x128xf32>
    %145 = arith.addf %143, %144 : vector<8x128xf32>
    %146 = vector.broadcast %29 : f32 to vector<8x128xf32>
    %147 = arith.mulf %105, %146 : vector<8x128xf32>
    %148 = arith.addf %145, %147 : vector<8x128xf32>
    %149 = vector.broadcast %30 : f32 to vector<8x128xf32>
    %150 = arith.mulf %123, %149 : vector<8x128xf32>
    %151 = arith.addf %148, %150 : vector<8x128xf32>
    %152 = vector.broadcast %31 : f32 to vector<8x128xf32>
    %153 = arith.mulf %141, %152 : vector<8x128xf32>
    %154 = arith.addf %151, %153 : vector<8x128xf32>
    %c0_9 = arith.constant 0 : index
    %c0_10 = arith.constant 0 : index
    %155 = vector.load %arg3[%c0_9, %c0_10] : memref<8x128xf32, #tpu.memory_space<vmem>>, vector<8x128xf32>
    tpu.vector_store %arg3[%c0_9, %c0_10], %154 {strides = array<i32>} : memref<8x128xf32, #tpu.memory_space<vmem>>, vector<8x128xf32>,
    return
  }
  func.func @transform_0(%arg0: i32, %arg1: memref<33xf32, #tpu.memory_space<smem>>) -> (i32, i32) {
    %c0_i32 = arith.constant 0 : i32
    %c0_i32_0 = arith.constant 0 : i32
    return %arg0, %c0_i32 : i32, i32
  }
  func.func @transform_1(%arg0: i32, %arg1: memref<33xf32, #tpu.memory_space<smem>>) -> (i32, i32) {
    %c0_i32 = arith.constant 0 : i32
    %c0_i32_0 = arith.constant 0 : i32
    return %arg0, %c0_i32 : i32, i32
  }
}

</mosaic_0001>

<bundles_post_ra>
// kernel: tpu_custom_call.1
= control target key start
LH: loop header
LB: loop body
LE: loop exit
PB: predicated region body
PF: predicated region fallthrough
CT: control target
= control target key end

     0   :  { %s334_s9 = smov [#allocation3]   ;;  %s421_s0 = inlined_call_operand.hbm [shape: f32[33], index: 0, kind: input, shape index: {}]   ;;  %s422_s1 = inlined_call_operand.hbm [shape: f32[8,128], index: 1, kind: input, shape index: {}]   ;;  %s423_s2 = inlined_call_operand.hbm [shape: f32[8,128], index: 2, kind: output, shape index: {}]  }
   0x1   :  { %8 = dma.hbm_to_smem %s421_s0, 16, %s334_s9, [#allocation2] }
   0x2   :  { %328 = dma.done.wait [#allocation2], 16 }
   0x3   :  { %329 = vsyncadd [#allocation2], 4294967280 }
   0x4   :  { %10 = sfence }
   0x5   :  { %11 = vsyncpa [#allocation5], 0 }
   0x6   :  { %12 = vsyncpa [#allocation6], 0  ;;  %s335_s12 = smov [#allocation4]  }
   0x7   :  { %s19_s13 = sshll.u32 %s335_s12, 4  ;;  %s20_s13 = int_to_ptr.vmem [resolvable:$true] %s19_s13 }
   0x8   :  { %s296_s14 = scalar_lea.vmem %s20_s13, 128  ;;  %p301_p1 = scmp.lt.s32.totalorder %s20_s13, %s20_s13 }
   0x9   :  { %p297_p0 = scmp.ne.s32.totalorder %s20_s13, %s296_s14  ;;  %p302_p2 = scmp.lt.s32.totalorder %s296_s14, %s296_s14 }
   0xb   :  { %p303_p3 = por %p302_p2, %p301_p1 }
   0xd   :  { %p304_p4 = pnand %p303_p3, %p297_p0 }
   0xf   :  { %307 = shalt.err (!%p304_p4)
}
  0x10   :  { %22 = dma.hbm_to_vmem [thread:$0]  %s422_s1, 128, %s20_s13, [#allocation5]  }
  0x11   :  { %330 = dma.done.wait [#allocation5], 128  }
  0x12   :  { %331 = vsyncadd [#allocation5], 4294967168  ;;  %s26_s0 = sld [smem:[#allocation3]]  ;;  %v59_v0 = vld [vmem:[#allocation4] sm:$0xff] }
  0x13   :  { %s205_s17 = sld [smem:[#allocation3 + $0x1]] }
  0x14   :  { %s206_s18 = sld [smem:[#allocation3 + $0x2]] }
  0x15   :  { %s207_s19 = sld [smem:[#allocation3 + $0x3]] }
  0x16   :  { %s208_s20 = sld [smem:[#allocation3 + $0x4]] }
  0x17   :  { %s209_s21 = sld [smem:[#allocation3 + $0x5]] }
  0x18   :  { %s210_s22 = sld [smem:[#allocation3 + $0x6]]  ;;  %v60_v1 = vstv %s26_s0 }
  0x19   :  { %s211_s23 = sld [smem:[#allocation3 + $0x7]]  ;;  %v61_v2 = vmul.f32 %v60_v1, %v59_v0  ;;  %v70_v3 = vstv %s205_s17 }
  0x1a   :  { %v71_v4 = vmul.f32 %v70_v3, %v59_v0  ;;  %v80_v5 = vstv %s206_s18  ;;  %s358_s1 = sld [smem:[#allocation3 + $0x8]] }
  0x1b   :  { %v81_v6 = vmul.f32 %v80_v5, %v59_v0  ;;  %v90_v7 = vstv %s207_s19  ;;  %s360_s24 = sld [smem:[#allocation3 + $0x9]]  ;;  %s336_s19 = smov [#allocation7]  }
  0x1c   :  { %v62_v8 = vstv %s208_s20  ;;  %v91_v9 = vmul.f32 %v90_v7, %v59_v0  ;;  %s362_s25 = sld [smem:[#allocation3 + $0xa]]  ;;  %s196_s20 = sshll.u32 %s336_s19, 4  ;;  %s197_s20 = int_to_ptr.vmem [resolvable:$true] %s196_s20 }
  0x1d   :  { %v63_v10 = vadd.f32 %v62_v8, %v61_v2  ;;  %v72_v11 = vstv %s209_s21  ;;  %s364_s26 = sld [smem:[#allocation3 + $0xb]]  ;;  %s308_s21 = scalar_lea.vmem %s197_s20, 128 }
  0x1e   :  { %v73_v12 = vadd.f32 %v72_v11, %v71_v4  ;;  %v82_v13 = vstv %s210_s22  ;;  %s366_s27 = sld [smem:[#allocation3 + $0xc]]  ;;  %p309_p5 = scmp.ne.s32.totalorder %s197_s20, %s308_s21 }
  0x1f   :  { %v237_v14 = vmul.f32 -1.442695, %v63_v10  ;;  %v83_v15 = vadd.f32 %v82_v13, %v81_v6  ;;  %v92_v16 = vstv %s211_s23  ;;  %s368_s28 = sld [smem:[#allocation3 + $0xd]]  ;;  %p313_p6 = scmp.lt.s32.totalorder %s197_s20, %s197_s20 }
  0x20   :  { %v238_v17 = vmul.f32 -1.442695, %v73_v12  ;;  %v93_v18 = vadd.f32 %v92_v16, %v91_v9  ;;  %s370_s29 = sld [smem:[#allocation3 + $0xe]]  ;;  %v100_v29 = vstv %s358_s1  ;;  %p314_p7 = scmp.lt.s32.totalorder %s308_s21, %s308_s21 }
  0x21   :  { %248 = vpow2.f32 %v237_v14  ;;  %v239_v19 = vmul.f32 -1.442695, %v83_v15  ;;  %s372_s30 = sld [smem:[#allocation3 + $0xf]]  ;;  %v104_v30 = vstv %s360_s24 }
  0x22   :  { %250 = vpow2.f32 %v238_v17  ;;  %v240_v20 = vmul.f32 -1.442695, %v93_v18  ;;  %s374_s3 = sld [smem:[#allocation3 + $0x10]]  ;;  %v107_v31 = vstv %s362_s25  ;;  %p315_p8 = por %p314_p7, %p313_p6 }
  0x23   :  { %252 = vpow2.f32 %v239_v19  ;;  %s376_s4 = sld [smem:[#allocation3 + $0x11]]  ;;  %v110_v32 = vstv %s364_s26 }
  0x24   :  { %254 = vpow2.f32 %v240_v20  ;;  %s378_s5 = sld [smem:[#allocation3 + $0x12]]  ;;  %v119_v33 = vstv %s366_s27  ;;  %p316_p9 = pnand %p315_p8, %p309_p5 }
  0x25   :  { %s380_s6 = sld [smem:[#allocation3 + $0x13]]  ;;  %v123_v34 = vstv %s368_s28 }
  0x26   :  { %s382_s7 = sld [smem:[#allocation3 + $0x14]]  ;;  %v126_v35 = vstv %s370_s29 }
  0x27   :  { %s384_s8 = sld [smem:[#allocation3 + $0x15]]  ;;  %v129_v36 = vstv %s372_s30 }
  0x28   :  { %s386_s9 = sld [smem:[#allocation3 + $0x16]]  ;;  %v138_v37 = vstv %s374_s3 }
  0x29   :  { %s388_s10 = sld [smem:[#allocation3 + $0x18]]  ;;  %v142_v38 = vstv %s376_s4 }
  0x2a   :  { %s390_s11 = sld [smem:[#allocation3 + $0x19]]  ;;  %v145_v40 = vstv %s378_s5 }
  0x2b   :  { %s392_s12 = sld [smem:[#allocation3 + $0x1a]]  ;;  %v148_v41 = vstv %s380_s6 }
  0x2c   :  { %s394_s13 = sld [smem:[#allocation3 + $0x1b]]  ;;  %v157_v39 = vstv %s382_s7 }
  0x2d   :  { %s396_s14 = sld [smem:[#allocation3 + $0x17]]  ;;  %v161_v42 = vstv %s384_s8 }
  0x2e   :  { %v249_v21 = vpop.eup %248  ;;  %v164_v43 = vstv %s386_s9  ;;  %s232_s15 = sld [smem:[#allocation3 + $0x1c]] }
  0x2f   :  { %v251_v22 = vpop.eup %250  ;;  %v67_v23 = vadd.f32 1.0, %v249_v21  ;;  %v102_v45 = vstv %s388_s10  ;;  %s233_s16 = sld [smem:[#allocation3 + $0x1d]] }
  0x30   :  { %v253_v24 = vpop.eup %252  ;;  %v77_v25 = vadd.f32 1.0, %v251_v22  ;;  %v121_v46 = vstv %s390_s11  ;;  %s234_s0 = sld [smem:[#allocation3 + $0x1e]] }
  0x31   :  { %v255_v26 = vpop.eup %254  ;;  %256 = vrcp.f32 %v67_v23  ;;  %v87_v27 = vadd.f32 1.0, %v253_v24  ;;  %v140_v47 = vstv %s392_s12  ;;  %s236_s17 = sld [smem:[#allocation3 + $0x20]] }
  0x32   :  { %258 = vrcp.f32 %v77_v25  ;;  %v97_v28 = vadd.f32 1.0, %v255_v26  ;;  %v159_v48 = vstv %s394_s13  ;;  %s235_s18 = sld [smem:[#allocation3 + $0x1f]] }
  0x33   :  { %260 = vrcp.f32 %v87_v27  ;;  %v167_v3 = vstv %s396_s14 }
  0x34   :  { %262 = vrcp.f32 %v97_v28 }
  0x3e   :  { %v257_v44 = vpop.eup %256 }
  0x3f   :  { %v259_v49 = vpop.eup %258  ;;  %v101_v50 = vmul.f32 %v257_v44, %v100_v29  ;;  %v120_v51 = vmul.f32 %v257_v44, %v119_v33  ;;  %v139_v52 = vmul.f32 %v257_v44, %v138_v37  ;;  %v158_v53 = vmul.f32 %v257_v44, %v157_v39 }
  0x40   :  { %v261_v54 = vpop.eup %260  ;;  %v105_v55 = vmul.f32 %v259_v49, %v104_v30  ;;  %v124_v56 = vmul.f32 %v259_v49, %v123_v34  ;;  %v143_v57 = vmul.f32 %v259_v49, %v142_v38  ;;  %v162_v58 = vmul.f32 %v259_v49, %v161_v42 }
  0x41   :  { %v263_v59 = vpop.eup %262  ;;  %v103_v60 = vadd.f32 %v102_v45, %v101_v50  ;;  %v108_v61 = vmul.f32 %v261_v54, %v107_v31  ;;  %v122_v62 = vadd.f32 %v121_v46, %v120_v51  ;;  %v127_v63 = vmul.f32 %v261_v54, %v126_v35 }
  0x42   :  { %v111_v0 = vmul.f32 %v263_v59, %v110_v32  ;;  %v141_v1 = vadd.f32 %v140_v47, %v139_v52  ;;  %v146_v2 = vmul.f32 %v261_v54, %v145_v40  ;;  %v130_v6 = vmul.f32 %v263_v59, %v129_v36 }
  0x43   :  { %v106_v4 = vadd.f32 %v105_v55, %v103_v60  ;;  %v125_v5 = vadd.f32 %v124_v56, %v122_v62  ;;  %v160_v7 = vadd.f32 %v159_v48, %v158_v53  ;;  %v149_v9 = vmul.f32 %v263_v59, %v148_v41 }
  0x44   :  { %v144_v8 = vadd.f32 %v143_v57, %v141_v1  ;;  %v165_v10 = vmul.f32 %v261_v54, %v164_v43  ;;  %v168_v14 = vmul.f32 %v263_v59, %v167_v3  ;;  %v176_v33 = vstv %s232_s15 }
  0x45   :  { %v109_v11 = vadd.f32 %v108_v61, %v106_v4  ;;  %v128_v12 = vadd.f32 %v127_v63, %v125_v5  ;;  %v163_v13 = vadd.f32 %v162_v58, %v160_v7  ;;  %v180_v34 = vstv %s233_s16 }
  0x46   :  { %v147_v15 = vadd.f32 %v146_v2, %v144_v8  ;;  %v178_v36 = vstv %s236_s17  ;;  %v183_v37 = vstv %s234_s0  ;;  %v186_v42 = vstv %s235_s18 }
  0x47   :  { %v112_v16 = vadd.f32 %v111_v0, %v109_v11  ;;  %v131_v17 = vadd.f32 %v130_v6, %v128_v12  ;;  %v166_v18 = vadd.f32 %v165_v10, %v163_v13 }
  0x48   :  { %v150_v19 = vadd.f32 %v149_v9, %v147_v15 }
  0x49   :  { %v241_v20 = vmul.f32 -1.442695, %v112_v16  ;;  %v242_v21 = vmul.f32 -1.442695, %v131_v17  ;;  %v169_v22 = vadd.f32 %v168_v14, %v166_v18 }
  0x4a   :  { %v243_v23 = vmul.f32 -1.442695, %v150_v19 }
  0x4b   :  { %264 = vpow2.f32 %v241_v20  ;;  %v244_v24 = vmul.f32 -1.442695, %v169_v22 }
  0x4c   :  { %266 = vpow2.f32 %v242_v21 }
  0x4d   :  { %268 = vpow2.f32 %v243_v23 }
  0x4e   :  { %270 = vpow2.f32 %v244_v24 }
  0x58   :  { %v265_v25 = vpop.eup %264 }
  0x59   :  { %v267_v26 = vpop.eup %266  ;;  %v116_v27 = vadd.f32 1.0, %v265_v25 }
  0x5a   :  { %v269_v28 = vpop.eup %268  ;;  %v135_v29 = vadd.f32 1.0, %v267_v26 }
  0x5b   :  { %v271_v30 = vpop.eup %270  ;;  %272 = vrcp.f32 %v116_v27  ;;  %v154_v31 = vadd.f32 1.0, %v269_v28 }
  0x5c   :  { %274 = vrcp.f32 %v135_v29  ;;  %v173_v32 = vadd.f32 1.0, %v271_v30 }
  0x5d   :  { %276 = vrcp.f32 %v154_v31 }
  0x5e   :  { %278 = vrcp.f32 %v173_v32 }
  0x68   :  { %v273_v35 = vpop.eup %272 }
  0x69   :  { %v275_v38 = vpop.eup %274  ;;  %v177_v39 = vmul.f32 %v273_v35, %v176_v33 }
  0x6a   :  { %v277_v40 = vpop.eup %276  ;;  %v181_v41 = vmul.f32 %v275_v38, %v180_v34 }
  0x6b   :  { %v279_v43 = vpop.eup %278  ;;  %v179_v44 = vadd.f32 %v178_v36, %v177_v39  ;;  %v184_v45 = vmul.f32 %v277_v40, %v183_v37 }
  0x6c   :  { %v187_v47 = vmul.f32 %v279_v43, %v186_v42 }
  0x6d   :  { %v182_v46 = vadd.f32 %v181_v41, %v179_v44 }
  0x6f   :  { %v185_v48 = vadd.f32 %v184_v45, %v182_v46 }
  0x71   :  { %v188_v49 = vadd.f32 %v187_v47, %v185_v48 }
  0x73   :  { %189 = vst [vmem:[#allocation7] sm:$0xff] %v188_v49 }
  0x74   :  { %319 = shalt.err (!%p316_p9)
}
  0x75   :  { %199 = dma.vmem_to_hbm [thread:$0]  %s197_s20, 128, %s423_s2, [#allocation6]  }
  0x76   :  { %332 = dma.done.wait [#allocation6], 128  }
  0x77   :  { %333 = vsyncadd [#allocation6], 4294967168 }
  0x78   :  { %203 = vsyncpa [#allocation5], 1 }
  0x79   :  { %204 = vsyncpa [#allocation6], 1 }

</bundles_post_ra>
